<compile_context>
chip_gen: v5e
topology: v5e:2x2
jax: 0.10.0
libtpu: 0.0.40
codegen_flags: <defaults>
</compile_context>

<pallas_src>
import functools

import jax
import jax.numpy as jnp
from jax.experimental import pallas as pl
from jax.experimental.pallas import tpu as pltpu


def _round_up(x, m):
    return (x + m - 1) // m * m


def _query_vmem_capacity():
    # Per-TensorCore VMEM capacity (v5e/v6e: 128 MiB, v7x: 64 MiB).
    try:
        cap = int(pltpu.get_tpu_info().vmem_capacity_bytes)
        if cap > 0:
            return cap
    except Exception:
        pass
    return 64 << 20   # conservative fallback (v7x-sized)


_VMEM_CAP_BYTES = _query_vmem_capacity()


def _vq_kernel(e_aug_ref, e_t_ref, z_ref, zq_ref, idx_ref, sse_ref, *,
               hw, tile_s, d_model, k_pad, k_chunk, cross_dtype, exact):
    """One grid step = one batch block x one spatial tile.

    e_aug_ref: (K_pad, D+1)  codebook [-2E | ||e||^2], cross_dtype
    e_t_ref  : (D, K_pad)    codebook transposed, f32 (exact reconstruction)
    z_ref    : (Bblk, D, TS) input slab, channels on sublanes / spatial on lanes
    zq_ref   : (Bblk, D, TS) quantized output slab
    idx_ref  : (Bblk, 1, TS) argmin indices (lane-dense int32)
    sse_ref  : (Bblk, 1, 1)  per-tile partial sum((z_q - z)^2)
    """
    b_blk = z_ref.shape[0]
    chunks = [(c0, min(k_chunk, k_pad - c0)) for c0 in range(0, k_pad, k_chunk)]

    need_mask = (hw % tile_s) != 0
    if need_mask:
        s = pl.program_id(1)
        lane = jax.lax.broadcasted_iota(jnp.int32, (1, tile_s), 1)
        valid = (s * tile_s + lane) < hw

    ones_row = jnp.ones((1, tile_s), dtype=jnp.float32)

    # TODO(synk): if chunk count becomes large, switch the static chunk loop
    #             to lax.fori_loop to bound live ranges.
    for bl in range(b_blk):
        z = z_ref[bl]                                             # (D, TS) f32

        if exact:
            # Reference formulation (kept for argmin / tie parity with torch):
            #   d = ||e||^2 + ||z||^2 - 2 e.z   (the -2 is folded into E_aug).
            z_sq = jnp.sum(z * z, axis=0, keepdims=True)          # (1, TS)
            z_aug = z
        else:
            # Fast path: d = E_aug @ [z; 1] = ||e||^2 - 2 e.z straight off the
            # MXU (||z||^2 dropped: argmin-invariant per-column constant).
            z_aug = jnp.concatenate([z, ones_row], axis=0).astype(cross_dtype)

        # ---- pass 1: running (min, argmin) over codebook chunks -----------
        d_min = None
        idx_min = None
        for c0, kc in chunks:
            if exact:
                neg2cross = jnp.dot(e_aug_ref[c0:c0 + kc, :d_model], z_aug,
                                    preferred_element_type=jnp.float32)
                d_c = (e_aug_ref[c0:c0 + kc, d_model:d_model + 1] + z_sq
                       + neg2cross)                               # (kc, TS)
            else:
                d_c = jnp.dot(e_aug_ref[c0:c0 + kc, :], z_aug,
                              preferred_element_type=jnp.float32)  # (kc, TS)
            row_c = jax.lax.broadcasted_iota(jnp.int32, (kc, tile_s), 0) + c0
            dmin_c = jnp.min(d_c, axis=0, keepdims=True)          # (1, TS)
            # First-index tie-break within the chunk (matches torch.argmin).
            idx_c = jnp.min(jnp.where(d_c == dmin_c, row_c, jnp.int32(k_pad)),
                            axis=0, keepdims=True)                # (1, TS)
            if d_min is None:
                d_min, idx_min = dmin_c, idx_c
            else:
                # Strict < keeps the earlier chunk on ties -> global
                # first-index tie-break.
                idx_min = jnp.where(dmin_c < d_min, idx_c, idx_min)
                d_min = jnp.minimum(dmin_c, d_min)
        idx_ref[bl] = idx_min

        # ---- pass 2: exact f32 codebook lookup, chunked one-hot @ E^T -----
        zq = None
        for c0, kc in chunks:
            row_c = jax.lax.broadcasted_iota(jnp.int32, (kc, tile_s), 0) + c0
            onehot_c = (row_c == idx_min).astype(jnp.float32)     # (kc, TS)
            part = jnp.dot(e_t_ref[:, c0:c0 + kc], onehot_c,
                           preferred_element_type=jnp.float32)    # (D, TS)
            zq = part if zq is None else zq + part
        zq_ref[bl] = zq.astype(zq_ref.dtype)

        # ---- per-tile SSE partial for the VQ loss (padded lanes masked) ---
        diff = zq - z
        if need_mask:
            diff = jnp.where(valid, diff, 0.0)
        sse_ref[bl] = jnp.sum(diff * diff).reshape(1, 1)


@functools.partial(jax.jit,
                   static_argnames=("commitment_cost", "tile_s_max",
                                    "cross_dtype", "k_chunk_max"))
def vector_quantizer_forward(z_nchw, embedding, commitment_cost=0.25,
                             tile_s_max=None, cross_dtype=jnp.bfloat16,
                             k_chunk_max=512):
    """Forward pass of VectorQuantizer.

    z_nchw   : (B, C, H, W) float32, C == embedding_dim
    embedding: (K, D) float32 codebook
    returns  : (z_q NCHW, min_encoding_indices (B*H*W, 1) int32, vq_loss)
    """
    B, C, H, W = z_nchw.shape
    K, D = embedding.shape
    assert C == D, "channel dim must equal embedding_dim"
    HW = H * W

    exact = jnp.dtype(cross_dtype) == jnp.dtype(jnp.float32)
    cb = jnp.dtype(cross_dtype).itemsize

    # ---- per-chip budgets --------------------------------------------------
    vmem_cap = _VMEM_CAP_BYTES
    vmem_clamp = int(vmem_cap * 0.72)      # ~46 MiB on v7x, ~92 MiB on v5e/v6e

    # ---- codebook chunking (bounds the (K,TS) working set) -----------------
    K_pad = _round_up(K, 8)
    if K_pad <= k_chunk_max:
        k_chunk = K_pad
    else:
        k_chunk = _round_up(min(k_chunk_max, K_pad), 128)
    k_eff = min(K_pad, k_chunk)

    # Resident codebook VMEM (lane-padded): E_aug (K_pad, D+1) + E^T (D, K_pad).
    cb_buf_bytes = (K_pad * _round_up(D + 1, 128) * cb
                    + _round_up(D, 8) * _round_up(K_pad, 128) * 4)
    # Constant index_map => double buffering only doubles the footprint; use a
    # single buffer once the codebook is big enough for that to matter (v7x).
    single_buf_codebook = cb_buf_bytes > (1 << 20)
    n_cb_buf = 1 if single_buf_codebook else 2

    def _vmem_bytes(ts, bb):
        return (2 * (2 * bb * C * ts * 4)            # z in + z_q out (2x buffered)
                + 2 * bb * _round_up(ts, 128) * 4    # idx out (lane-dense)
                + 2 * bb * 8 * 128 * 4               # sse out (padded block)
                + n_cb_buf * cb_buf_bytes            # resident codebook
                + 6 * k_eff * ts * 4                 # per-chunk (Kc, TS) temps
                + (2 << 20))                         # Mosaic internal slack

    # ---- spatial tile: prefer a divisor of H*W (no pad / no slice) ---------
    if tile_s_max is None:
        cap = 2048 if vmem_cap <= (64 << 20) else 4096   # v7x vs v5e/v6e
    else:
        cap = tile_s_max
    cap = max(128, _round_up(cap, 128))
    if HW % 128 == 0:
        cands = [t for t in range(128, min(cap, HW) + 1, 128) if HW % t == 0]
    else:
        cands = list(range(128, min(_round_up(HW, 128), cap) + 1, 128))
    tile_s = cands[0]
    for t in sorted(cands, reverse=True):
        if _vmem_bytes(t, 1) <= vmem_clamp:
            tile_s = t
            break
    hw_pad = _round_up(HW, tile_s)
    num_s = hw_pad // tile_s

    # ---- tiny-launch batch packing (keep >= 2 grid steps for v7x's 2 TCs) --
    b_blk = 1
    if num_s == 1:
        for dvs in range(2, B + 1):
            if (B % dvs == 0 and (B // dvs) >= 2 and dvs * tile_s <= 8192
                    and _vmem_bytes(tile_s, dvs) <= vmem_clamp):
                b_blk = dvs

    vmem_limit = int(min(max(_vmem_bytes(tile_s, b_blk), 32 << 20), vmem_clamp))

    # ---- inputs: NCHW -> (B, C, HW) is a free reshape -----------------------
    z_flat = z_nchw.reshape(B, C, HW).astype(jnp.float32)
    if hw_pad != HW:
        # Only when HW has no tile-sized divisor (avoided for the usual
        # power-of-two spatial shapes, so no extra HBM pass in the common case).
        z_flat = jnp.pad(z_flat, ((0, 0), (0, 0), (0, hw_pad - HW)))

    # ---- hoisted codebook precompute (amortized over all grid steps) --------
    emb_f32 = embedding.astype(jnp.float32)
    e_sq = jnp.sum(emb_f32 * emb_f32, axis=1, keepdims=True)      # (K, 1)
    e_aug = jnp.concatenate([-2.0 * emb_f32, e_sq], axis=1)       # (K, D+1)
    e_t = emb_f32.T                                               # (D, K)
    if K_pad != K:
        # Sentinel rows: zero weights + huge ||e||^2 so they never win argmin.
        pad_rows = jnp.concatenate(
            [jnp.zeros((K_pad - K, D), jnp.float32),
             jnp.full((K_pad - K, 1), 1e30, jnp.float32)], axis=1)
        e_aug = jnp.concatenate([e_aug, pad_rows], axis=0)
        e_t = jnp.pad(e_t, ((0, 0), (0, K_pad - K)))
    e_aug = e_aug.astype(cross_dtype)

    kernel = functools.partial(
        _vq_kernel, hw=HW, tile_s=tile_s, d_model=D, k_pad=K_pad,
        k_chunk=k_chunk, cross_dtype=cross_dtype, exact=exact)

    cb_kwargs = ({"pipeline_mode": pl.Buffered(1)}
                 if single_buf_codebook else {})

    zq_pad, idx_pad, sse_part = pl.pallas_call(
        kernel,
        out_shape=(
            jax.ShapeDtypeStruct((B, C, hw_pad), jnp.float32),
            jax.ShapeDtypeStruct((B, num_s, tile_s), jnp.int32),
            jax.ShapeDtypeStruct((B, num_s, 1), jnp.float32),
        ),
        grid_spec=pltpu.PrefetchScalarGridSpec(
            num_scalar_prefetch=0,
            grid=(B // b_blk, num_s),
            in_specs=[
                pl.BlockSpec((K_pad, D + 1), lambda b, s: (0, 0), **cb_kwargs),
                pl.BlockSpec((D, K_pad), lambda b, s: (0, 0), **cb_kwargs),
                pl.BlockSpec((b_blk, C, tile_s), lambda b, s: (b, 0, s)),
            ],
            out_specs=[
                pl.BlockSpec((b_blk, C, tile_s), lambda b, s: (b, 0, s)),
                pl.BlockSpec((b_blk, 1, tile_s), lambda b, s: (b, s, 0)),
                pl.BlockSpec((b_blk, 1, 1), lambda b, s: (b, s, 0)),
            ],
        ),
        compiler_params=pltpu.CompilerParams(
            dimension_semantics=("parallel", "parallel"),  # no cross-step acc
            vmem_limit_bytes=vmem_limit,
        ),
    )(e_aug, e_t, z_flat)

    zq = zq_pad if hw_pad == HW else zq_pad[:, :, :HW]
    zq_nchw = zq.reshape(B, C, H, W)
    idx_flat = idx_pad.reshape(B, hw_pad)
    if hw_pad != HW:
        idx_flat = idx_flat[:, :HW]
    indices = idx_flat.reshape(B * HW, 1)

    # Forward value of q_latent_loss and e_latent_loss is identical (z_q vs z).
    mse = jnp.sum(sse_part) / jnp.float32(B * HW * D)
    vq_loss = mse + commitment_cost * mse

    # Straight-through: forward value of z + (z_q - z).detach() is exactly z_q.
    # TODO(synk): custom_vjp for the straight-through / codebook gradients.
    return zq_nchw, indices, vq_loss


def _reference(z_nchw, embedding, commitment_cost=0.25):
    """Pure-JAX (f32) reference mirroring the PyTorch module's forward."""
    B, C, H, W = z_nchw.shape
    K, D = embedding.shape
    z = jnp.transpose(z_nchw, (0, 2, 3, 1)).reshape(-1, D)
    d = (jnp.sum(z ** 2, axis=1, keepdims=True) + jnp.sum(embedding ** 2, axis=1)
         - 2.0 * z @ embedding.T)
    idx = jnp.argmin(d, axis=1)
    zq = embedding[idx]
    mse = jnp.mean((zq - z) ** 2)
    vq_loss = mse + commitment_cost * mse
    zq_nchw = jnp.transpose(zq.reshape(B, H, W, D), (0, 3, 1, 2))
    return zq_nchw, idx[:, None].astype(jnp.int32), vq_loss


if __name__ == "__main__":
    key = jax.random.PRNGKey(0)
    k_z, k_e = jax.random.split(key)

    # Small shapes consistent with the module: B=2, C=embedding_dim=8, H=W=16.
    B, D, H, W = 2, 8, 16, 16
    num_embeddings = 64
    commitment_cost = 0.25

    z = jax.random.normal(k_z, (B, D, H, W), dtype=jnp.float32)
    # nn.Embedding weight init: uniform(-1/K, 1/K)
    embedding = jax.random.uniform(
        k_e, (num_embeddings, D), dtype=jnp.float32,
        minval=-1.0 / num_embeddings, maxval=1.0 / num_embeddings)

    # (1) Exact configuration (f32, reference distance formulation):
    #     must match the pure-JAX reference.
    zq32, idx32, loss32 = vector_quantizer_forward(
        z, embedding, commitment_cost=commitment_cost, cross_dtype=jnp.float32)
    jax.block_until_ready((zq32, idx32, loss32))

    zq_r, idx_r, loss_r = _reference(z, embedding, commitment_cost)
    assert zq32.shape == (B, D, H, W)
    assert idx32.shape == (B * H * W, 1)
    assert jnp.allclose(zq32, zq_r, atol=1e-5)
    assert jnp.array_equal(idx32, idx_r)
    assert jnp.allclose(loss32, loss_r, rtol=1e-5, atol=1e-6)

    # (2) Default perf configuration (folded bf16 distance matmul on the MXU).
    #     Near-equidistant codewords may resolve differently, so check
    #     self-consistency (z_q rows are exact codebook rows for the returned
    #     indices) and that the loss matches to tolerance.
    zq_bf, idx_bf, loss_bf = vector_quantizer_forward(
        z, embedding, commitment_cost=commitment_cost)
    jax.block_until_ready((zq_bf, idx_bf, loss_bf))
    zq_rows = jnp.transpose(zq_bf, (0, 2, 3, 1)).reshape(-1, D)
    assert idx_bf.shape == (B * H * W, 1)
    assert jnp.allclose(zq_rows, embedding[idx_bf[:, 0]], atol=1e-4)
    assert jnp.allclose(loss_bf, loss_r, rtol=1e-2, atol=1e-3)

    print("KERNEL_OK")
</pallas_src>

<mosaic_0001>
module attributes {stable_mosaic.version = 11 : i64} {
  func.func @_vq_kernel(%arg0: i32, %arg1: i32, %arg2: memref<64x9xf32, #tpu.memory_space<vmem>>, %arg3: memref<8x64xf32, #tpu.memory_space<vmem>>, %arg4: memref<1x8x256xf32, #tpu.memory_space<vmem>>, %arg5: memref<1x8x256xf32, #tpu.memory_space<vmem>>, %arg6: memref<1x1x256xi32, #tpu.memory_space<vmem>>, %arg7: memref<1x1x1xf32, #tpu.memory_space<vmem>>) attributes {dimension_semantics = [#tpu.dimension_semantics<parallel>, #tpu.dimension_semantics<parallel>], iteration_bounds = array<i64: 2, 1>, scalar_prefetch = 0 : i64, scratch_operands = 0 : i64, tpu.core_type = #tpu.core_type<tc>, window_params = [{pipeline_mode = #tpu.pipeline_mode<synchronous>, transform_indices = @transform_0, window_bounds = array<i64: 64, 9>}, {pipeline_mode = #tpu.pipeline_mode<synchronous>, transform_indices = @transform_1, window_bounds = array<i64: 8, 64>}, {transform_indices = @transform_2, window_bounds = array<i64: 1, 8, 256>}, {transform_indices = @transform_3, window_bounds = array<i64: 1, 8, 256>}, {transform_indices = @transform_4, window_bounds = array<i64: 1, 1, 256>}, {transform_indices = @transform_5, window_bounds = array<i64: 1, 1, 1>}]} {
    %c0 = arith.constant 0 : index
    %c0_0 = arith.constant 0 : index
    %c0_1 = arith.constant 0 : index
    %0 = vector.load %arg4[%c0, %c0_0, %c0_1] : memref<1x8x256xf32, #tpu.memory_space<vmem>>, vector<1x8x256xf32>
    %1 = vector.shape_cast %0 : vector<1x8x256xf32> to vector<8x256xf32>
    %2 = arith.mulf %1, %1 : vector<8x256xf32>
    %cst = arith.constant dense<0.000000e+00> : vector<256xf32>
    %3 = vector.multi_reduction <add>, %2, %cst [0] : vector<8x256xf32> to vector<256xf32>
    %4 = vector.shape_cast %3 : vector<256xf32> to vector<1x256xf32>
    %c0_2 = arith.constant 0 : index
    %c0_3 = arith.constant 0 : index
    %5 = vector.load %arg2[%c0_2, %c0_3] : memref<64x9xf32, #tpu.memory_space<vmem>>, vector<64x8xf32>
    %cst_4 = arith.constant dense<0.000000e+00> : vector<64x256xf32>
    %6 = tpu.matmul %5, %1, %cst_4 {dimension_numbers = #tpu.dot_dimension_numbers<[1], [0], [0], [1], [0, 0, 1, 1], [], []>} : vector<64x8xf32>, vector<8x256xf32>, vector<64x256xf32> -> vector<64x256xf32>
    %c0_5 = arith.constant 0 : index
    %c8 = arith.constant 8 : index
    %7 = vector.load %arg2[%c0_5, %c8] : memref<64x9xf32, #tpu.memory_space<vmem>>, vector<64x1xf32>
    %8 = vector.broadcast %7 : vector<64x1xf32> to vector<64x256xf32>
    %9 = vector.broadcast %4 : vector<1x256xf32> to vector<64x256xf32>
    %10 = arith.addf %8, %9 : vector<64x256xf32>
    %11 = arith.addf %10, %6 : vector<64x256xf32>
    %12 = tpu.iota {dimensions = array<i32: 0>} : vector<64x256xi32>
    %c0_i32 = arith.constant 0 : i32
    %13 = vector.broadcast %c0_i32 : i32 to vector<64x256xi32>
    %14 = arith.addi %12, %13 : vector<64x256xi32>
    %cst_6 = arith.constant dense<0x7F800000> : vector<256xf32>
    %15 = vector.multi_reduction <minimumf>, %11, %cst_6 [0] : vector<64x256xf32> to vector<256xf32>
    %16 = vector.shape_cast %15 : vector<256xf32> to vector<1x256xf32>
    %17 = vector.broadcast %16 : vector<1x256xf32> to vector<64x256xf32>
    %18 = arith.cmpf oeq, %11, %17 : vector<64x256xf32>
    %c64_i32 = arith.constant 64 : i32
    %19 = vector.broadcast %c64_i32 : i32 to vector<64x256xi32>
    %20 = arith.select %18, %14, %19 : vector<64x256xi1>, vector<64x256xi32>
    %cst_7 = arith.constant dense<2147483647> : vector<256xi32>
    %21 = vector.multi_reduction <minsi>, %20, %cst_7 [0] : vector<64x256xi32> to vector<256xi32>
    %22 = vector.shape_cast %21 : vector<256xi32> to vector<1x256xi32>
    %c0_8 = arith.constant 0 : index
    %c0_9 = arith.constant 0 : index
    %c0_10 = arith.constant 0 : index
    %23 = vector.load %arg6[%c0_8, %c0_9, %c0_10] : memref<1x1x256xi32, #tpu.memory_space<vmem>>, vector<1x1x256xi32>
    %24 = vector.shape_cast %23 : vector<1x1x256xi32> to vector<1x256xi32>
    %25 = vector.shape_cast %22 : vector<1x256xi32> to vector<1x1x256xi32>
    tpu.vector_store %arg6[%c0_8, %c0_9, %c0_10], %25 {strides = array<i32>} : memref<1x1x256xi32, #tpu.memory_space<vmem>>, vector<1x1x256xi32>,
    %26 = tpu.iota {dimensions = array<i32: 0>} : vector<64x256xi32>
    %c0_i32_11 = arith.constant 0 : i32
    %27 = vector.broadcast %c0_i32_11 : i32 to vector<64x256xi32>
    %28 = arith.addi %26, %27 : vector<64x256xi32>
    %29 = vector.broadcast %22 : vector<1x256xi32> to vector<64x256xi32>
    %30 = arith.cmpi eq, %28, %29 : vector<64x256xi32>
    %31 = arith.extui %30 : vector<64x256xi1> to vector<64x256xi32>
    %32 = arith.sitofp %31 : vector<64x256xi32> to vector<64x256xf32>
    %c0_12 = arith.constant 0 : index
    %c0_13 = arith.constant 0 : index
    %33 = vector.load %arg3[%c0_12, %c0_13] : memref<8x64xf32, #tpu.memory_space<vmem>>, vector<8x64xf32>
    %cst_14 = arith.constant dense<0.000000e+00> : vector<8x256xf32>
    %34 = tpu.matmul %33, %32, %cst_14 {dimension_numbers = #tpu.dot_dimension_numbers<[1], [0], [0], [1], [0, 0, 1, 1], [], []>} : vector<8x64xf32>, vector<64x256xf32>, vector<8x256xf32> -> vector<8x256xf32>
    %c0_15 = arith.constant 0 : index
    %c0_16 = arith.constant 0 : index
    %c0_17 = arith.constant 0 : index
    %35 = vector.load %arg5[%c0_15, %c0_16, %c0_17] : memref<1x8x256xf32, #tpu.memory_space<vmem>>, vector<1x8x256xf32>
    %36 = vector.shape_cast %35 : vector<1x8x256xf32> to vector<8x256xf32>
    %37 = vector.shape_cast %34 : vector<8x256xf32> to vector<1x8x256xf32>
    tpu.vector_store %arg5[%c0_15, %c0_16, %c0_17], %37 {strides = array<i32>} : memref<1x8x256xf32, #tpu.memory_space<vmem>>, vector<1x8x256xf32>,
    %38 = arith.subf %34, %1 : vector<8x256xf32>
    %39 = arith.mulf %38, %38 : vector<8x256xf32>
    %40 = vector.shape_cast %39 : vector<8x256xf32> to vector<1x8x256xf32>
    %cst_18 = arith.constant dense<0.000000e+00> : vector<1xf32>
    %41 = vector.multi_reduction <add>, %40, %cst_18 [1, 2] : vector<1x8x256xf32> to vector<1xf32>
    %42 = vector.shape_cast %41 : vector<1xf32> to vector<1x1x1xf32>
    %43 = vector.extract %42[0, 0, 0] : f32 from vector<1x1x1xf32>
    %44 = vector.broadcast %43 : f32 to vector<1x1xf32>
    %c0_19 = arith.constant 0 : index
    %c0_20 = arith.constant 0 : index
    %c0_21 = arith.constant 0 : index
    %45 = vector.load %arg7[%c0_19, %c0_20, %c0_21] : memref<1x1x1xf32, #tpu.memory_space<vmem>>, vector<1x1x1xf32>
    %46 = vector.shape_cast %45 : vector<1x1x1xf32> to vector<1x1xf32>
    %47 = vector.shape_cast %44 : vector<1x1xf32> to vector<1x1x1xf32>
    tpu.vector_store %arg7[%c0_19, %c0_20, %c0_21], %47 {strides = array<i32>} : memref<1x1x1xf32, #tpu.memory_space<vmem>>, vector<1x1x1xf32>,
    return
  }
  func.func @transform_0(%arg0: i32, %arg1: i32) -> (i32, i32) {
    %c0_i32 = arith.constant 0 : i32
    %c0_i32_0 = arith.constant 0 : i32
    %c0_i32_1 = arith.constant 0 : i32
    return %c0_i32, %c0_i32_0 : i32, i32
  }
  func.func @transform_1(%arg0: i32, %arg1: i32) -> (i32, i32) {
    %c0_i32 = arith.constant 0 : i32
    %c0_i32_0 = arith.constant 0 : i32
    %c0_i32_1 = arith.constant 0 : i32
    return %c0_i32, %c0_i32_0 : i32, i32
  }
  func.func @transform_2(%arg0: i32, %arg1: i32) -> (i32, i32, i32) {
    %c0_i32 = arith.constant 0 : i32
    %c0_i32_0 = arith.constant 0 : i32
    return %arg0, %c0_i32, %arg1 : i32, i32, i32
  }
  func.func @transform_3(%arg0: i32, %arg1: i32) -> (i32, i32, i32) {
    %c0_i32 = arith.constant 0 : i32
    %c0_i32_0 = arith.constant 0 : i32
    return %arg0, %c0_i32, %arg1 : i32, i32, i32
  }
  func.func @transform_4(%arg0: i32, %arg1: i32) -> (i32, i32, i32) {
    %c0_i32 = arith.constant 0 : i32
    %c0_i32_0 = arith.constant 0 : i32
    return %arg0, %arg1, %c0_i32 : i32, i32, i32
  }
  func.func @transform_5(%arg0: i32, %arg1: i32) -> (i32, i32, i32) {
    %c0_i32 = arith.constant 0 : i32
    %c0_i32_0 = arith.constant 0 : i32
    return %arg0, %arg1, %c0_i32 : i32, i32, i32
  }
}

</mosaic_0001>

<bundles_post_ra>
// kernel: vector_quantizer_forward.1
= control target key start
LH: loop header
LB: loop body
LE: loop exit
PB: predicated region body
PF: predicated region fallthrough
CT: control target
= control target key end

     0   :  { %11 = vsyncpa [#allocation3], 0  ;;  %s1427_s0 = inlined_call_operand.vmem [shape: f32[64,9], index: 0, kind: input, shape index: {}]   ;;  %s1428_s1 = inlined_call_operand.vmem [shape: f32[8,64], index: 1, kind: input, shape index: {}]   ;;  %s1429_s2 = inlined_call_operand.vmem [shape: f32[2,8,256], index: 2, kind: input, shape index: {}]   ;;  %s1430_s3 = inlined_call_operand.vmem [shape: f32[2,8,256], index: 3, kind: output, shape index: {0}]   ;;  %s1431_s4 = inlined_call_operand.hbm [shape: s32[2,1,256], index: 4, kind: output, shape index: {1}]   ;;  %s1432_s5 = inlined_call_operand.vmem [shape: f32[2,1,1], index: 5, kind: output, shape index: {2}]  }
   0x1   :  { %13 = vsyncpa [#allocation3 + $0x1], 0  ;;  %s1141_s18 = smov 0   ;;  %s1143_s19 = smov 0  }
   0x2   :  { %s1145_s20 = smov 0   ;;  %s1147_s21 = smov 0  }
   0x3   :  { %s1149_s22 = smov 0   ;;  %s1151_s23 = smov 0  }
   0x4 LB: > { %s899_s24 = sadd.s32 4294967295, %s1107_s23   ;;  %s900_s25 = sadd.s32 4294967294, %s1107_s23   ;;  %s1107_s23 = sphi %s1151_s23, %s19_s23   ;;  %s1103_s22 = sphi %s1149_s22, %s1439_s22   ;;  %s1099_s21 = sphi %s1147_s21, %s1438_s21   ;;  %s1095_s20 = sphi %s1145_s20, %s1437_s20   ;;  %s1091_s19 = sphi %s1143_s19, %s1436_s19   ;;  %s1087_s18 = sphi %s1141_s18, %s1435_s18  }
   0x5   : > { %s31_s26 = sadd.s32 1, %s1103_s22  ;;  %s138_s27 = sadd.s32 1, %s1095_s20 }
   0x6   : > { %p33_p0 = scmp.ge.s32.totalorder %s31_s26, 2  ;;  %p148_p1 = scmp.ne.s32.totalorder %s1095_s20, %s1091_s19 }
   0x7   : > { %p149_p2 = scmp.eq.s32.totalorder %s899_s24, 1  ;;  %p154_p3 = scmp.ne.s32.totalorder %s1091_s19, %s1087_s18 }
   0x8   : > { %s1441_s26 = smov (%p33_p0, %s31_s26), 0  ;;  %p155_p5 = scmp.eq.s32.totalorder %s900_s25, 1 }
   0x9   : > { %p1181_p4 = por %p149_p2, %p148_p1  ;;  %s133_s29 = ssub.s32 %s1103_s22, %s1441_s26 }
   0xa   : > { %p903_p6 = scmp.ge.s32.totalorder %s1107_s23, 1  ;;  %p136_p7 = scmp.eq.s32.totalorder %s133_s29, 0 }
   0xb   : > { %p1188_p8 = por %p155_p5, %p154_p3  ;;  %p220_p9 = scmp.lt.s32.totalorder %s1107_s23, 3 }
   0xc   : > { %s1194_s6 = scalar_select %p136_p7, %s1095_s20, %s138_s27  }
   0xd   : > { %p221_p10 = pnand %p903_p6, %p220_p9 }
   0xe   : > { %p268_p11 = scmp.lt.s32.totalorder (!%p221_p10), %s1099_s21, 1  ;;  %s256_s15 = sand.u32 (!%p221_p10), 1, %s1091_s19  }
   0xf   : > { %224 = sbr.rel (%p221_p10) target bundleno = 569 (0x239), region = 32  ;;  %s1355_s16 = sshll.u32 (!%p221_p10), %s256_s15, 1 }
  0x10   : > { %s960_s8 = sshll.u32 (!%p221_p10), %s1099_s21, 1  ;;  %s731_s24 = scalar_lea.sflag (!%p221_p10), [#allocation3], %s256_s15 }
  0x11   : > { %s753_s12 = scalar_lea.hbm (!%p221_p10), %s1431_s4, %s960_s8 }
  0x12   : > { %s757_s13 = sshll.u32 (!%p221_p10), %s753_s12, 4  ;;  %s758_s13 = int_to_ptr.hbm [resolvable:$true] %s757_s13 }
  0x13   : > { %s1043_s25 = sshra.s32 (!%p221_p10), %s758_s13, 4  ;;  %s1044_s25 = int_to_ptr.hbm [resolvable:$true] %s1043_s25 }
  0x14   : > { %v309_v0 = vld [vmem:[%s1427_s0] sm:$0xff]  ;;  %v1109_v1 = vmov 8   ;;  %v311_v2 = vld [vmem:[%s1427_s0 + $0x10] sm:$0xff]  ;;  %s1204_s11 = scalar_select %p268_p11, %s1099_s21, 1  ;;  %vm317_vm0 = vcmask 64512   ;;  %v314_v6 = vld [vmem:[%s1427_s0 + $0x28] sm:$0xff] }
  0x15   : > { %1026 = vset.pattern.permute.xlu0 %v1109_v1  ;;  %1027 = vset.pattern.permute.xlu1 %v1109_v1  ;;  %v313_v3 = vld [vmem:[%s1427_s0 + $0x20] sm:$0xff]  ;;  %v312_v7 = vld [vmem:[%s1427_s0 + $0x18] sm:$0xff]  ;;  %v310_v8 = vld [vmem:[%s1427_s0 + $0x8] sm:$0xff]  ;;  %s1045_s27 = scalar_lea.hbm %s1044_s25, 2  ;;  %p1050_p1 = scmp.lt.s32.totalorder %s1044_s25, %s1431_s4 }
  0x16   : > { %425 = vperm.xlu0 %1026, %v309_v0   ;;  %433 = vperm.xlu1 %1027, %v311_v2   ;;  %s963_s14 = sshll.u32 %s1204_s11, 4  ;;  %v315_v9 = vld [vmem:[%s1427_s0 + $0x30] sm:$0xff]  ;;  %v316_v10 = vld [vmem:[%s1427_s0 + $0x38] sm:$0xff]  ;;  %p1046_p12 = scmp.ne.s32.totalorder %s1044_s25, %s1045_s27 }
  0x17   : > { %1028 = vset.pattern.permute.xlu2 %v1109_v1  ;;  %s275_s17 = scalar_lea.vmem %s1429_s2, %s963_s14  ;;  %s285_s7 = scalar_lea.vmem %s1430_s3, %s963_s14 }
  0x18   : > { %441 = vperm.xlu2 %1028, %v313_v3   ;;  %v1215_v4 = vld [vmem:[%s275_s17] sm:$0xff]  ;;  %v1217_v5 = vld [vmem:[%s275_s17 + $0x8] sm:$0xff]  ;;  %s258_s17 = scalar_lea.vmem [#allocation2], %s1355_s16  ;;  %p1047_p13 = pnand %p1046_p12, %p1181_p4 }
  0x19   : > { %357 = vmatpush.msra.mxu0 %v1215_v4  ;;  %965 = vmatpush.msra.mxu2 %v1215_v4  ;;  %v295_v11 = vmul.f32 %v1215_v4, %v1215_v4  ;;  %v296_v12 = vmul.f32 %v1217_v5, %v1217_v5  ;;  %s755_s14 = sshll.u32 %s258_s17, 4  ;;  %s756_s14 = int_to_ptr.vmem [resolvable:$true] %s755_s14 }
  0x1a   : > { %398 = vmatpush.msra.mxu1 %v1217_v5  ;;  %966 = vmatpush.msra.mxu3 %v1217_v5  ;;  %p1048_p0 = pneg %p1047_p13 }
  0x1b   : > { %909 = vmatmul.msk.f32.vlgmr.msra.gmra.mxu0 %vm317_vm0, %v309_v0  ;;  %914 = vmatmul.msk.f32.vlgmr.msra.gmra.mxu2 %vm317_vm0, %v314_v6  ;;  %v297_v14 = vrot.slane %v295_v11, 4  ;;  %v303_v16 = vrot.slane %v296_v12, 4 }
  0x1c   : > { %917 = vmatmul.msk.f32.vlgmr.msra.gmra.mxu1 %vm317_vm0, %v309_v0  ;;  %922 = vmatmul.msk.f32.vlgmr.msra.gmra.mxu3 %vm317_vm0, %v314_v6 }
  0x1d   : > { %v298_v17 = vadd.f32 %v297_v14, %v295_v11  ;;  %v304_v18 = vadd.f32 %v303_v16, %v296_v12 }
  0x1e   : > { %429 = vperm.xlu0 %1026, %v310_v8   ;;  %437 = vperm.xlu1 %1027, %v312_v7  }
  0x1f   : > { %v299_v20 = vrot.slane %v298_v17, 2  ;;  %v305_v22 = vrot.slane %v304_v18, 2 }
  0x20   : > { %445 = vperm.xlu2 %1028, %v314_v6  }
  0x21   : > { %v300_v26 = vadd.f32 %v299_v20, %v298_v17  ;;  %v306_v28 = vadd.f32 %v305_v22, %v304_v18 }
  0x23   : > { %910 = vmatmul.msk.f32.gmra.mxu0 %vm317_vm0, %v310_v8  ;;  %915 = vmatmul.msk.f32.gmra.mxu2 %vm317_vm0, %v315_v9  ;;  %v301_v31 = vrot.slane %v300_v26, 1  ;;  %v307_v33 = vrot.slane %v306_v28, 1 }
  0x24   : > { %918 = vmatmul.msk.f32.gmra.mxu1 %vm317_vm0, %v310_v8  ;;  %923 = vmatmul.msk.f32.gmra.mxu3 %vm317_vm0, %v315_v9 }
  0x25   : > { %v302_v36 = vadd.f32 %v301_v31, %v300_v26  ;;  %v308_v37 = vadd.f32 %v307_v33, %v306_v28 }
  0x26   : > { %453 = vperm.xlu1 %1027, %v316_v10   ;;  %449 = vperm.xlu0 %1026, %v315_v9  }
  0x2b   : > { %911 = vmatmul.msk.f32.gmra.mxu0 %vm317_vm0, %v311_v2  ;;  %916 = vmatmul.msk.f32.gmra.mxu2 %vm317_vm0, %v316_v10 }
  0x2c   : > { %919 = vmatmul.msk.f32.gmra.mxu1 %vm317_vm0, %v311_v2  ;;  %924 = vmatmul.msk.f32.gmra.mxu3 %vm317_vm0, %v316_v10 }
  0x33   : > { %912 = vmatmul.msk.f32.gmra.mxu0 %vm317_vm0, %v312_v7 }
  0x34   : > { %920 = vmatmul.msk.f32.gmra.mxu1 %vm317_vm0, %v312_v7 }
  0x3b   : > { %913 = vmatmul.msk.f32.gmra.mxu0 %vm317_vm0, %v313_v3 }
  0x3c   : > { %921 = vmatmul.msk.f32.gmra.mxu1 %vm317_vm0, %v313_v3 }
  0x72   : > { %v442_v29 = vpop.permute.xlu2 %441 }
  0x73   : > { %v464_v0 = vadd.f32 %v442_v29, %v302_v36  ;;  %v465_v6 = vadd.f32 %v442_v29, %v308_v37 }
  0x7a   : > { %v446_v44 = vpop.permute.xlu2 %445 }
  0x7b   : > { %v466_v53 = vadd.f32 %v446_v44, %v302_v36  ;;  %v467_v56 = vadd.f32 %v446_v44, %v308_v37 }
  0x88   : > { %v426_v23 = vpop.permute.xlu0 %425  ;;  %v434_v24 = vpop.permute.xlu1 %433 }
  0x89   : > { %v460_v46 = vadd.f32 %v434_v24, %v302_v36  ;;  %v461_v49 = vadd.f32 %v434_v24, %v308_v37  ;;  %v456_v51 = vadd.f32 %v426_v23, %v302_v36  ;;  %v457_v54 = vadd.f32 %v426_v23, %v308_v37 }
  0x90   : > { %v430_v34 = vpop.permute.xlu0 %429  ;;  %v438_v35 = vpop.permute.xlu1 %437 }
  0x91   : > { %v458_v39 = vadd.f32 %v430_v34, %v302_v36  ;;  %v462_v40 = vadd.f32 %v438_v35, %v302_v36  ;;  %v459_v42 = vadd.f32 %v430_v34, %v308_v37  ;;  %v463_v43 = vadd.f32 %v438_v35, %v308_v37 }
  0x92   : > { %v488_v34 = vlaneseq }
  0x98   : > { %v359_v13 = vpop.f32.mrf.mxu0  ;;  %v450_v57 = vpop.permute.xlu0 %449 }
  0x99   : > { %v400_v15 = vpop.f32.mrf.mxu1  ;;  %v454_v60 = vpop.permute.xlu1 %453  ;;  %v472_v63 = vadd.f32 %v456_v51, %v359_v13  ;;  %v468_v2 = vadd.f32 %v450_v57, %v302_v36  ;;  %v469_v8 = vadd.f32 %v450_v57, %v308_v37 }
  0x9a   : > { %v1276_v3 = vadd.f32 %v457_v54, %v400_v15  ;;  %v470_v11 = vadd.f32 %v454_v60, %v302_v36  ;;  %v471_v18 = vadd.f32 %v454_v60, %v308_v37 }
  0x9e   : > { %v374_v25 = vpop.f32.mrf.mxu2 }
  0x9f   : > { %v415_v27 = vpop.f32.mrf.mxu3  ;;  %v1274_v1 = vadd.f32 %v466_v53, %v374_v25 }
  0xa0   : > { %v362_v19 = vpop.f32.mrf.mxu0  ;;  %v1278_v7 = vadd.f32 %v467_v56, %v415_v27 }
  0xa1   : > { %v403_v21 = vpop.f32.mrf.mxu1  ;;  %v1262_v52 = vadd.f32 %v458_v39, %v362_v19  ;;  %v1295_v39 = vshrl.u32 %v488_v34, 7 }
  0xa2   : > { %v1264_v55 = vadd.f32 %v459_v42, %v403_v21 }
  0xa3   : > { %v1298_v44 = vadd.s32 8, %v1295_v39  ;;  %v1310_v53 = vadd.s32 40, %v1295_v39  ;;  %v1313_v54 = vadd.s32 48, %v1295_v39  ;;  %v1316_v56 = vadd.s32 56, %v1295_v39 }
  0xa6   : > { %v377_v38 = vpop.f32.mrf.mxu2 }
  0xa7   : > { %v418_v41 = vpop.f32.mrf.mxu3  ;;  %v484_v21 = vadd.f32 %v468_v2, %v377_v38 }
  0xa8   : > { %v365_v30 = vpop.f32.mrf.mxu0  ;;  %v1287_v24 = vadd.f32 %v469_v8, %v418_v41 }
  0xa9   : > { %v406_v32 = vpop.f32.mrf.mxu1  ;;  %v1266_v58 = vadd.f32 %v460_v46, %v365_v30  ;;  %v1301_v46 = vadd.s32 16, %v1295_v39 }
  0xaa   : > { %v1270_v61 = vadd.f32 %v461_v49, %v406_v32  ;;  %v1307_v49 = vadd.s32 32, %v1295_v39 }
  0xab   : > { %v497_v12 = vmin.f32 %v472_v63, %v1266_v58 }
  0xac   : > { %v510_v19 = vmin.f32 %v1276_v3, %v1270_v61 }
  0xae   : > { %v380_v9 = vpop.f32.mrf.mxu2 }
  0xaf   : > { %v421_v14 = vpop.f32.mrf.mxu3  ;;  %v486_v22 = vadd.f32 %v470_v11, %v380_v9 }
  0xb0   : > { %v368_v45 = vpop.f32.mrf.mxu0  ;;  %v1289_v25 = vadd.f32 %v471_v18, %v421_v14 }
  0xb1   : > { %v1258_v47 = vadd.f32 %v462_v40, %v368_v45  ;;  %v409_v48 = vpop.f32.mrf.mxu1 }
  0xb2   : > { %v1260_v50 = vadd.f32 %v463_v43, %v409_v48  ;;  %v1304_v48 = vadd.s32 24, %v1295_v39 }
  0xb3   : > { %v498_v59 = vmin.f32 %v1262_v52, %v1258_v47 }
  0xb4   : > { %v511_v62 = vmin.f32 %v1264_v55, %v1260_v50 }
  0xb5   : > { %v500_v16 = vmin.f32 %v498_v59, %v1274_v1 }
  0xb6   : > { %v513_v15 = vmin.f32 %v511_v62, %v1278_v7 }
  0xb7   : > { %v502_v27 = vmin.f32 %v500_v16, %v486_v22 }
  0xb8   : > { %v371_v10 = vpop.f32.mrf.mxu0  ;;  %v515_v29 = vmin.f32 %v513_v15, %v1289_v25 }
  0xb9   : > { %v480_v17 = vadd.f32 %v464_v0, %v371_v10  ;;  %v412_v13 = vpop.f32.mrf.mxu1 }
  0xba   : > { %v1285_v20 = vadd.f32 %v465_v6, %v412_v13 }
  0xbb   : > { %v499_v23 = vmin.f32 %v497_v12, %v480_v17 }
  0xbc   : > { %v512_v26 = vmin.f32 %v510_v19, %v1285_v20 }
  0xbd   : > { %v501_v28 = vmin.f32 %v499_v23, %v484_v21 }
  0xbe   : > { %v514_v30 = vmin.f32 %v512_v26, %v1287_v24 }
  0xbf   : > { %v503_v31 = vmin.f32 %v501_v28, %v502_v27 }
  0xc0   : > { %v516_v32 = vmin.f32 %v514_v30, %v515_v29 }
  0xc1   : > { %v504_v33 = vrot.slane %v503_v31, 4 }
  0xc2   : > { %v517_v35 = vrot.slane %v516_v32, 4 }
  0xc3   : > { %v505_v36 = vmin.f32 %v503_v31, %v504_v33  ;;  %v1110_v31 = vmov 1.0  }
  0xc4   : > { %v518_v37 = vmin.f32 %v516_v32, %v517_v35 }
  0xc5   : > { %v506_v38 = vrot.slane %v505_v36, 2 }
  0xc6   : > { %v519_v40 = vrot.slane %v518_v37, 2 }
  0xc7   : > { %v507_v41 = vmin.f32 %v505_v36, %v506_v38 }
  0xc8   : > { %v520_v42 = vmin.f32 %v518_v37, %v519_v40 }
  0xc9   : > { %v508_v43 = vrot.slane %v507_v41, 1 }
  0xca   : > { %v521_v45 = vrot.slane %v520_v42, 1 }
  0xcb   : > { %v509_v51 = vmin.f32 %v507_v41, %v508_v43 }
  0xcc   : > { %v522_v57 = vmin.f32 %v520_v42, %v521_v45 }
  0xcd   : > { %vm523_vm1 = vcmp.eq.f32.partialorder %v472_v63, %v509_v51  ;;  %vm525_vm2 = vcmp.eq.f32.partialorder %v1262_v52, %v509_v51  ;;  %vm527_vm3 = vcmp.eq.f32.partialorder %v1266_v58, %v509_v51  ;;  %vm529_vm4 = vcmp.eq.f32.partialorder %v1258_v47, %v509_v51 }
  0xce   : > { %vm531_vm5 = vcmp.eq.f32.partialorder %v480_v17, %v509_v51  ;;  %vm533_vm6 = vcmp.eq.f32.partialorder %v1274_v1, %v509_v51  ;;  %vm535_vm7 = vcmp.eq.f32.partialorder %v484_v21, %v509_v51  ;;  %vm537_vm8 = vcmp.eq.f32.partialorder %v486_v22, %v509_v51 }
  0xcf   : > { %v539_v59 = vsel %vm523_vm1, %v1295_v39, 64  ;;  %v541_v60 = vsel %vm525_vm2, %v1298_v44, 64  ;;  %v543_v62 = vsel %vm527_vm3, %v1301_v46, 64  ;;  %v545_v0 = vsel %vm529_vm4, %v1304_v48, 64 }
  0xd0   : > { %v547_v63 = vsel %vm531_vm5, %v1307_v49, 64  ;;  %v549_v52 = vsel %vm533_vm6, %v1310_v53, 64  ;;  %v551_v58 = vsel %vm535_vm7, %v1313_v54, 64  ;;  %v553_v47 = vsel %vm537_vm8, %v1316_v56, 64 }
  0xd1   : > { %vm555_vm9 = vcmp.lt.s32.totalorder %v539_v59, %v543_v62  ;;  %vm557_vm10 = vcmp.lt.s32.totalorder %v541_v60, %v545_v0  ;;  %vm524_vm11 = vcmp.eq.f32.partialorder %v1276_v3, %v522_v57  ;;  %vm526_vm12 = vcmp.eq.f32.partialorder %v1264_v55, %v522_v57 }
  0xd2   : > { %v556_v1 = vsel %vm555_vm9, %v539_v59, %v543_v62  ;;  %v558_v2 = vsel %vm557_vm10, %v541_v60, %v545_v0  ;;  %vm528_vm15 = vcmp.eq.f32.partialorder %v1270_v61, %v522_v57  ;;  %vm530_vm0 = vcmp.eq.f32.partialorder %v1260_v50, %v522_v57 }
  0xd3   : > { %vm559_vm13 = vcmp.lt.s32.totalorder %v556_v1, %v547_v63  ;;  %vm561_vm14 = vcmp.lt.s32.totalorder %v558_v2, %v549_v52  ;;  %vm532_vm1 = vcmp.eq.f32.partialorder %v1285_v20, %v522_v57  ;;  %vm534_vm2 = vcmp.eq.f32.partialorder %v1278_v7, %v522_v57 }
  0xd4   : > { %v560_v6 = vsel %vm559_vm13, %v556_v1, %v547_v63  ;;  %v562_v8 = vsel %vm561_vm14, %v558_v2, %v549_v52  ;;  %v540_v9 = vsel %vm524_vm11, %v1295_v39, 64  ;;  %v542_v3 = vsel %vm526_vm12, %v1298_v44, 64 }
  0xd5   : > { %vm563_vm3 = vcmp.lt.s32.totalorder %v560_v6, %v551_v58  ;;  %vm565_vm4 = vcmp.lt.s32.totalorder %v562_v8, %v553_v47  ;;  %v544_v11 = vsel %vm528_vm15, %v1301_v46, 64  ;;  %v546_v61 = vsel %vm530_vm0, %v1304_v48, 64 }
  0xd6   : > { %v564_v10 = vsel %vm563_vm3, %v560_v6, %v551_v58  ;;  %v566_v55 = vsel %vm565_vm4, %v562_v8, %v553_v47  ;;  %vm536_vm6 = vcmp.eq.f32.partialorder %v1287_v24, %v522_v57  ;;  %vm538_vm7 = vcmp.eq.f32.partialorder %v1289_v25, %v522_v57 }
  0xd7   : > { %vm567_vm5 = vcmp.lt.s32.totalorder %v564_v10, %v566_v55  ;;  %v548_v12 = vsel %vm532_vm1, %v1307_v49, 64  ;;  %vm578_vm8 = vcmp.lt.s32.totalorder %v540_v9, %v544_v11  ;;  %vm580_vm9 = vcmp.lt.s32.totalorder %v542_v3, %v546_v61 }
  0xd8   : > { %v568_v50 = vsel %vm567_vm5, %v564_v10, %v566_v55  ;;  %v550_v16 = vsel %vm534_vm2, %v1310_v53, 64  ;;  %v579_v17 = vsel %vm578_vm8, %v540_v9, %v544_v11  ;;  %v581_v13 = vsel %vm580_vm9, %v542_v3, %v546_v61 }
  0xd9   : > { %v569_v14 = vrot.slane %v568_v50, 4  ;;  %v552_v18 = vsel %vm536_vm6, %v1313_v54, 64  ;;  %vm582_vm10 = vcmp.lt.s32.totalorder %v579_v17, %v548_v12  ;;  %vm584_vm11 = vcmp.lt.s32.totalorder %v581_v13, %v550_v16 }
  0xda   : > { %v554_v19 = vsel %vm538_vm7, %v1316_v56, 64  ;;  %v583_v15 = vsel %vm582_vm10, %v579_v17, %v548_v12  ;;  %v585_v20 = vsel %vm584_vm11, %v581_v13, %v550_v16  ;;  %vm602_vm11 = vcmask 1040384  }
  0xdb   : > { %vm570_vm12 = vcmp.lt.s32.totalorder %v568_v50, %v569_v14  ;;  %vm586_vm13 = vcmp.lt.s32.totalorder %v583_v15, %v552_v18  ;;  %vm588_vm14 = vcmp.lt.s32.totalorder %v585_v20, %v554_v19 }
  0xdc   : > { %v571_v21 = vsel %vm570_vm12, %v568_v50, %v569_v14  ;;  %v587_v23 = vsel %vm586_vm13, %v583_v15, %v552_v18  ;;  %v589_v24 = vsel %vm588_vm14, %v585_v20, %v554_v19  ;;  %vm606_vm13 = vcmp.lt.s32.totalorder %v488_v34, 256  ;;  %v657_v34 = vld [vmem:[%s1428_s1] sm:$0xff] }
  0xdd   : > { %v572_v22 = vrot.slane %v571_v21, 2  ;;  %vm590_vm15 = vcmp.lt.s32.totalorder %v587_v23, %v589_v24 }
  0xde   : > { %v591_v7 = vsel %vm590_vm15, %v587_v23, %v589_v24 }
  0xdf   : > { %vm573_vm0 = vcmp.lt.s32.totalorder %v571_v21, %v572_v22  ;;  %v592_v26 = vrot.slane %v591_v7, 4 }
  0xe0   : > { %v574_v25 = vsel %vm573_vm0, %v571_v21, %v572_v22 }
  0xe1   : > { %v575_v27 = vrot.slane %v574_v25, 1  ;;  %vm593_vm1 = vcmp.lt.s32.totalorder %v591_v7, %v592_v26 }
  0xe2   : > { %v594_v28 = vsel %vm593_vm1, %v591_v7, %v592_v26 }
  0xe3   : > { %vm576_vm2 = vcmp.lt.s32.totalorder %v574_v25, %v575_v27  ;;  %v595_v30 = vrot.slane %v594_v28, 2 }
  0xe4   : > { %v577_v29 = vsel %vm576_vm2, %v574_v25, %v575_v27  ;;  %vm658_vm2 = vcmask 523264  }
  0xe5   : > { %vm623_vm3 = vcmp.eq.s32.totalorder %v1316_v56, %v577_v29  ;;  %vm596_vm4 = vcmp.lt.s32.totalorder %v594_v28, %v595_v30  ;;  %vm621_vm5 = vcmp.eq.s32.totalorder %v1313_v54, %v577_v29  ;;  %vm619_vm6 = vcmp.eq.s32.totalorder %v1310_v53, %v577_v29 }
  0xe6   : > { %941 = vmatpush.msk.msrb.mxu2 %vm623_vm3, %v1110_v31  ;;  %v597_v32 = vsel %vm596_vm4, %v594_v28, %v595_v30  ;;  %vm617_vm8 = vcmp.eq.s32.totalorder %v1307_v49, %v577_v29  ;;  %vm615_vm10 = vcmp.eq.s32.totalorder %v1304_v48, %v577_v29  ;;  %vm613_vm14 = vcmp.eq.s32.totalorder %v1301_v46, %v577_v29 }
  0xe7   : > { %v598_v33 = vrot.slane %v597_v32, 1  ;;  %vm611_vm0 = vcmp.eq.s32.totalorder %v1298_v44, %v577_v29  ;;  %vm609_vm3 = vcmp.eq.s32.totalorder %v1295_v39, %v577_v29 }
  0xe8   : > { %942 = vmatpush.msk.msrb.mxu2 %vm621_vm5, %v1110_v31 }
  0xe9   : > { %vm599_vm7 = vcmp.lt.s32.totalorder %v597_v32, %v598_v33 }
  0xea   : > { %943 = vmatpush.msk.msrb.mxu2 %vm619_vm6, %v1110_v31  ;;  %v600_v35 = vsel %vm599_vm7, %v597_v32, %v598_v33 }
  0xeb   : > { %vm624_vm9 = vcmp.eq.s32.totalorder %v1316_v56, %v600_v35  ;;  %vm622_vm12 = vcmp.eq.s32.totalorder %v1313_v54, %v600_v35  ;;  %v601_v36 = vrot.slane %v600_v35, 7  ;;  %vm620_vm15 = vcmp.eq.s32.totalorder %v1310_v53, %v600_v35 }
  0xec   : > { %944 = vmatpush.msk.msrb.mxu2 %vm617_vm8, %v1110_v31  ;;  %950 = vmatpush.msk.msrb.mxu3 %vm624_vm9, %v1110_v31  ;;  %vm618_vm1 = vcmp.eq.s32.totalorder %v1307_v49, %v600_v35  ;;  %vm616_vm4 = vcmp.eq.s32.totalorder %v1304_v48, %v600_v35  ;;  %vm614_vm5 = vcmp.eq.s32.totalorder %v1301_v46, %v600_v35 }
  0xed   : > { %v603_v37 = vsel %vm602_vm11, %v577_v29, %v601_v36  ;;  %vm612_vm6 = vcmp.eq.s32.totalorder %v1298_v44, %v600_v35  ;;  %vm610_vm7 = vcmp.eq.s32.totalorder %v1295_v39, %v600_v35 }
  0xee   : > { %945 = vmatpush.msk.msrb.mxu2 %vm615_vm10, %v1110_v31  ;;  %951 = vmatpush.msk.msrb.mxu3 %vm622_vm12, %v1110_v31  ;;  %608 = vst.msk [vmem:[%s258_s17] sm:$0x3] %vm606_vm13, %v603_v37 }
  0xf0   : > { %946 = vmatpush.msk.msrb.mxu2 %vm613_vm14, %v1110_v31  ;;  %952 = vmatpush.msk.msrb.mxu3 %vm620_vm15, %v1110_v31 }
  0xf2   : > { %947 = vmatpush.msk.msrb.mxu2 %vm611_vm0, %v1110_v31  ;;  %953 = vmatpush.msk.msrb.mxu3 %vm618_vm1, %v1110_v31 }
  0xf4   : > { %948 = vmatpush.msk.msrb.mxu2 %vm609_vm3, %v1110_v31  ;;  %954 = vmatpush.msk.msrb.mxu3 %vm616_vm4, %v1110_v31 }
  0xf5   : > { %949 = vmatmul.msk.f32.vlgmr.msrb.gmra.mxu2 %vm658_vm2, %v657_v34 }
  0xf6   : > { %955 = vmatpush.msk.msrb.mxu3 %vm614_vm5, %v1110_v31 }
  0xf8   : > { %956 = vmatpush.msk.msrb.mxu3 %vm612_vm6, %v1110_v31 }
  0xfa   : > { %957 = vmatpush.msk.msrb.mxu3 %vm610_vm7, %v1110_v31 }
  0xfb   : > { %958 = vmatmul.msk.f32.vlgmr.msrb.gmra.mxu3 %vm658_vm2, %v657_v34 }
 0x178   : > { %v679_v38 = vpop.f32.mrf.mxu2 }
 0x179   : > { %702 = vst [vmem:[%s285_s7] sm:$0xff] %v679_v38  ;;  %v704_v40 = vsub.f32 %v679_v38, %v1215_v4 }
 0x17b   : > { %v706_v42 = vmul.f32 %v704_v40, %v704_v40 }
 0x17e   : > { %v699_v41 = vpop.f32.mrf.mxu3 }
 0x17f   : > { %703 = vst [vmem:[%s285_s7 + $0x8] sm:$0xff] %v699_v41  ;;  %v705_v43 = vsub.f32 %v699_v41, %v1217_v5  ;;  %s1049_s7 = scalar_lea.hbm %s1431_s4, 4 }
 0x180   : > { %p1051_p2 = scmp.lt.s32.totalorder %s1049_s7, %s1045_s27 }
 0x181   : > { %v707_v39 = vmul.f32 %v705_v43, %v705_v43 }
 0x182   : > { %p1052_p3 = por %p1051_p2, %p1050_p1 }
 0x183   : > { %v708_v44 = vadd.f32 %v707_v39, %v706_v42 }
 0x184   : > { %p1053_p5 = pnand %p1052_p3, %p1048_p0 }
 0x185   : > { %709 = vadd.xlane.f32.xlu2 %v708_v44 }
 0x186   : > { %1056 = shalt.err (!%p1053_p5)
}
 0x187   : > { %969 = dma.vmem_to_hbm [thread:$0]  (%p1181_p4), %s756_s14, 32, %s758_s13, %s731_s24   ;;  %vm719_vm8 = vcmask 0  }
 0x188   : > { %s292_s17 = scalar_lea.vmem %s1432_s5, %s1204_s11 }
 0x1f8   : > { %v710_v4 = vpop.xlane.xlu2 %709 }
 0x1f9   : > { %v711_v5 = vrot.slane %v710_v4, 4 }
 0x1fb   : > { %v712_v45 = vadd.f32 %v711_v5, %v710_v4 }
 0x1fd   : > { %v713_v46 = vrot.slane %v712_v45, 2 }
 0x1ff   : > { %v714_v48 = vadd.f32 %v713_v46, %v712_v45 }
 0x201   : > { %v715_v49 = vrot.slane %v714_v48, 1 }
 0x203   : > { %v716_v51 = vadd.f32 %v715_v49, %v714_v48 }
 0x205   : > { %967 = vpush %v716_v51 }
 0x236   : > { %s968_s10 = spop %967 }
 0x237   : > { %v718_v53 = vstv %s968_s10 }
 0x238   : > { %720 = vst.msk [vmem:[%s292_s17] sm:$0x1] %vm719_vm8, %v718_v53 }
 0x239 PF: > { %p975_p4 = scmp.ge.s32.totalorder %s1107_s23, 2  ;;  %s784_s28 = sand.u32 1, %s1087_s18  }
 0x23a   : > { %s785_s12 = scalar_lea.sflag [#allocation3], %s784_s28 }
 0x23b   : > { %p972_p6 = pnand %p975_p4, %p1188_p8 }
 0x23d   : > { %p973_p7 = pneg %p972_p6 }
 0x23f   : > { %1082 = dma.done.wait (%p973_p7), %s785_s12, 32  }
 0x240   : > { %1084 = vsyncadd (%p973_p7), %s785_s12, 4294967264  ;;  %s19_s23 = sadd.s32 1, %s1107_s23   ;;  %s1435_s18 = smov %s1091_s19 }
 0x241   : > { %p16_p9 = scmp.ge.s32.totalorder %s19_s23, 4   ;;  %s1436_s19 = smov %s1095_s20 }
 0x242   : > { %s1437_s20 = smov %s1194_s6  ;;  %s1438_s21 = smov %s1103_s22 }
 0x243   : > { %s1439_s22 = smov %s1441_s26  ;;  %18 = sbr.rel (!%p16_p9) target bundleno = 4 (0x4), region = 91 }
 0x248   :  { %800 = vsyncpa [#allocation3], 1 }
 0x249   :  { %802 = vsyncpa [#allocation3 + $0x1], 1 }

</bundles_post_ra>
